<compile_context>
chip_gen: v5e
topology: v5e:2x2
jax: 0.10.0
libtpu: 0.0.40
codegen_flags: <defaults>
</compile_context>

<pallas_src>
import functools

import jax
import jax.numpy as jnp
from jax.experimental import pallas as pl
from jax.experimental.pallas import tpu as pltpu

ALPHA = 0.1
BETA = 0.1
F32_EPS = 1.1920929e-07  # torch.finfo(torch.float32).eps


def _spex_loss_kernel(s1_ref, s2_ref, s3_ref, t_ref, out_ref,
                      tt_acc, d1_acc, p1_acc, d2_acc, p2_acc, d3_acc, p3_acc,
                      *, common_len, tile_t, batch):
    k = pl.program_id(0)
    nsteps = pl.num_programs(0)

    @pl.when(k == 0)
    def _init():
        for acc in (tt_acc, d1_acc, p1_acc, d2_acc, p2_acc, d3_acc, p3_acc):
            acc[...] = jnp.zeros_like(acc)

    def rsum(x):
        # (B, tile_t) -> (B, 1): vreg-wise VPU adds + one small cross-lane
        # reduce; hidden under the per-step DMA at these tile sizes.
        return jnp.sum(x, axis=-1, keepdims=True)

    def accumulate(mask):
        def load(ref):
            # Upcast per tile (supports bf16 inputs); zero masked lanes before
            # any multiply so padded/garbage lanes never pollute the sums.
            x = ref[...].astype(jnp.float32)
            if mask is not None:
                x = jnp.where(mask, x, 0.0)
            return x

        tgt = load(t_ref)
        s1 = load(s1_ref)
        s2 = load(s2_ref)
        s3 = load(s3_ref)

        # 7 streaming inner products per tile; no (B, T) temporaries.
        tt_acc[...] += rsum(tgt * tgt)
        d1_acc[...] += rsum(s1 * tgt)
        p1_acc[...] += rsum(s1 * s1)
        d2_acc[...] += rsum(s2 * tgt)
        p2_acc[...] += rsum(s2 * s2)
        d3_acc[...] += rsum(s3 * tgt)
        p3_acc[...] += rsum(s3 * s3)

    rem = common_len % tile_t  # trace-time Python int
    if rem == 0:
        # common_len divides evenly: every tile is full, no masking anywhere.
        accumulate(None)
    else:
        # Interior tiles lie fully inside common_len -> unmasked fast path.
        @pl.when(k < nsteps - 1)
        def _interior():
            accumulate(None)

        # Only the single tail tile pays for iota/compare/select masking.
        @pl.when(k == nsteps - 1)
        def _tail():
            col = jax.lax.broadcasted_iota(jnp.int32, (batch, tile_t), 1)
            accumulate(col < rem)

    @pl.when(k == nsteps - 1)
    def _finalize():
        eps = jnp.float32(F32_EPS)
        tt = tt_acc[...]

        def si_sdr_rows(dot, pp):
            a = (dot + eps) / (tt + eps)
            a2tt = a * a * tt
            num = a2tt + eps
            # ||pred - a*tgt||^2 = pp - 2*a*dot + a^2*tt ; clamp tiny negative
            # values from cancellation before adding eps.
            den = jnp.maximum(pp - 2.0 * a * dot + a2tt, 0.0) + eps
            return 10.0 * jnp.log10(num / den)  # (B, 1)

        v1 = si_sdr_rows(d1_acc[...], p1_acc[...])
        v2 = si_sdr_rows(d2_acc[...], p2_acc[...])
        v3 = si_sdr_rows(d3_acc[...], p3_acc[...])

        w1 = jnp.float32(-(1.0 - ALPHA - BETA) * 2.0)
        w2 = jnp.float32(-ALPHA * 2.0)
        w3 = jnp.float32(-BETA * 2.0)
        per_row = w1 * v1 + w2 * v2 + w3 * v3                     # (B, 1)
        out_ref[...] = jnp.sum(per_row, axis=0, keepdims=True) / jnp.float32(batch)


def spex_plus_loss_no_ce(s1, s2, s3, target, *, tile_t=None):
    """SpexPlusLossNoCe.forward. Inputs: (B, Ti) float arrays; returns scalar f32."""
    B = target.shape[0]
    common_len = min(s1.shape[-1], s2.shape[-1], s3.shape[-1], target.shape[-1])
    padded_len = ((common_len + 127) // 128) * 128
    itemsizes = [jnp.dtype(x.dtype).itemsize for x in (s1, s2, s3, target)]

    # Per-generation VMEM capacity (v5e/v6e 128 MiB, v7x 64 MiB per TC).
    try:
        vmem_cap = int(pltpu.get_tpu_info().vmem_capacity_bytes)
    except Exception:  # pragma: no cover - conservative fallback
        vmem_cap = 64 << 20

    if tile_t is None:
        # Budget: 4 inputs x double buffer must fit comfortably in VMEM.
        budget = min(vmem_cap // 2, 48 << 20)
        per_col = 2 * B * sum(itemsizes)      # double-buffered bytes per column
        tile_t = budget // max(per_col, 1)
        tile_t = min(tile_t, 32768)           # diminishing returns beyond this
    tile_t = int(min(int(tile_t), padded_len))
    tile_t = max(128, (tile_t // 128) * 128)  # lane-aligned

    grid = (pl.cdiv(common_len, tile_t),)

    # Explicit scoped-VMEM limit so big tiles don't trip per-gen defaults.
    dbuf_bytes = 2 * B * tile_t * sum(itemsizes)
    vmem_limit = int(min(vmem_cap, max(dbuf_bytes + (16 << 20), 32 << 20)))

    in_spec = pl.BlockSpec((B, tile_t), lambda k: (0, k))
    kernel = functools.partial(
        _spex_loss_kernel, common_len=common_len, tile_t=tile_t, batch=B)

    cost = pl.CostEstimate(
        flops=int(14 * B * common_len),
        transcendentals=int(3 * B),
        bytes_accessed=int(B * common_len * sum(itemsizes)),
    )

    out = pl.pallas_call(
        kernel,
        out_shape=jax.ShapeDtypeStruct((1, 1), jnp.float32),
        grid_spec=pltpu.PrefetchScalarGridSpec(
            num_scalar_prefetch=0,
            grid=grid,
            in_specs=[in_spec, in_spec, in_spec, in_spec],
            out_specs=pl.BlockSpec((1, 1), lambda k: (0, 0)),
            scratch_shapes=[pltpu.VMEM((B, 1), jnp.float32)] * 7,
        ),
        compiler_params=pltpu.CompilerParams(
            dimension_semantics=("arbitrary",),
            vmem_limit_bytes=vmem_limit,
        ),
        cost_estimate=cost,
    )(s1, s2, s3, target)
    return out[0, 0]


def _reference(s1, s2, s3, target):
    common_len = min(s1.shape[-1], s2.shape[-1], s3.shape[-1], target.shape[-1])
    s1, s2, s3, t = (x[:, :common_len].astype(jnp.float32) for x in (s1, s2, s3, target))
    eps = jnp.float32(F32_EPS)

    def si_sdr(pred):
        dot = jnp.sum(pred * t, axis=-1, keepdims=True)
        tt = jnp.sum(t * t, axis=-1, keepdims=True)
        a = (dot + eps) / (tt + eps)
        t_s = a * t
        noise = pred - t_s
        num = jnp.sum(t_s * t_s, axis=-1) + eps
        den = jnp.sum(noise * noise, axis=-1) + eps
        return jnp.mean(10.0 * jnp.log10(num / den))

    return (-(1.0 - ALPHA - BETA) * 2.0 * si_sdr(s1)
            - ALPHA * 2.0 * si_sdr(s2)
            - BETA * 2.0 * si_sdr(s3))


if __name__ == "__main__":
    key = jax.random.PRNGKey(0)
    k1, k2, k3, k4 = jax.random.split(key, 4)
    B = 4
    # Deliberately different lengths to exercise in-kernel common_len masking;
    # common_len = 1219 (not a multiple of 128) -> masked tail tile.
    s1 = jax.random.normal(k1, (B, 1300), dtype=jnp.float32)
    s2 = jax.random.normal(k2, (B, 1280), dtype=jnp.float32)
    s3 = jax.random.normal(k3, (B, 1250), dtype=jnp.float32)
    target = jax.random.normal(k4, (B, 1219), dtype=jnp.float32)

    ref = jax.block_until_ready(_reference(s1, s2, s3, target))

    # Auto-sized tile: whole (padded) common_len fits -> single grid step.
    loss = jax.block_until_ready(spex_plus_loss_no_ce(s1, s2, s3, target))
    assert jnp.allclose(loss, ref, rtol=1e-3, atol=1e-2), (loss, ref)

    # Forced small tile: multi-step streaming path (unmasked interior tiles
    # plus a masked tail tile), checks the accumulator/finalize logic.
    loss_small = jax.block_until_ready(
        spex_plus_loss_no_ce(s1, s2, s3, target, tile_t=256))
    assert jnp.allclose(loss_small, ref, rtol=1e-3, atol=1e-2), (loss_small, ref)

    print("KERNEL_OK")
</pallas_src>

<mosaic_0001>
module attributes {stable_mosaic.version = 11 : i64} {
  func.func @_spex_loss_kernel(%arg0: i32, %arg1: memref<4x1280xf32, #tpu.memory_space<vmem>>, %arg2: memref<4x1280xf32, #tpu.memory_space<vmem>>, %arg3: memref<4x1280xf32, #tpu.memory_space<vmem>>, %arg4: memref<4x1280xf32, #tpu.memory_space<vmem>>, %arg5: memref<1x1xf32, #tpu.memory_space<vmem>>, %arg6: memref<4x1xf32, #tpu.memory_space<vmem>>, %arg7: memref<4x1xf32, #tpu.memory_space<vmem>>, %arg8: memref<4x1xf32, #tpu.memory_space<vmem>>, %arg9: memref<4x1xf32, #tpu.memory_space<vmem>>, %arg10: memref<4x1xf32, #tpu.memory_space<vmem>>, %arg11: memref<4x1xf32, #tpu.memory_space<vmem>>, %arg12: memref<4x1xf32, #tpu.memory_space<vmem>>) attributes {dimension_semantics = [#tpu.dimension_semantics<arbitrary>], iteration_bounds = array<i64: 1>, scalar_prefetch = 0 : i64, scratch_operands = 7 : i64, tpu.core_type = #tpu.core_type<tc>, window_params = [{transform_indices = @transform_0, window_bounds = array<i64: 4, 1280>}, {transform_indices = @transform_1, window_bounds = array<i64: 4, 1280>}, {transform_indices = @transform_2, window_bounds = array<i64: 4, 1280>}, {transform_indices = @transform_3, window_bounds = array<i64: 4, 1280>}, {pipeline_mode = #tpu.pipeline_mode<synchronous>, transform_indices = @transform_4, window_bounds = array<i64: 1, 1>}]} {
    %c0_i32 = arith.constant 0 : i32
    %0 = arith.cmpi eq, %arg0, %c0_i32 : i32
    %1 = arith.extui %0 : i1 to i32
    %c0_i32_0 = arith.constant 0 : i32
    %2 = arith.cmpi ne, %1, %c0_i32_0 : i32
    scf.if %2 {
      %cst = arith.constant 0.000000e+00 : f32
      %12 = vector.broadcast %cst : f32 to vector<4x1xf32>
      %c0 = arith.constant 0 : index
      %c0_7 = arith.constant 0 : index
      %13 = vector.load %arg6[%c0, %c0_7] : memref<4x1xf32, #tpu.memory_space<vmem>>, vector<4x1xf32>
      tpu.vector_store %arg6[%c0, %c0_7], %12 {strides = array<i32>} : memref<4x1xf32, #tpu.memory_space<vmem>>, vector<4x1xf32>,
      %cst_8 = arith.constant 0.000000e+00 : f32
      %14 = vector.broadcast %cst_8 : f32 to vector<4x1xf32>
      %c0_9 = arith.constant 0 : index
      %c0_10 = arith.constant 0 : index
      %15 = vector.load %arg7[%c0_9, %c0_10] : memref<4x1xf32, #tpu.memory_space<vmem>>, vector<4x1xf32>
      tpu.vector_store %arg7[%c0_9, %c0_10], %14 {strides = array<i32>} : memref<4x1xf32, #tpu.memory_space<vmem>>, vector<4x1xf32>,
      %cst_11 = arith.constant 0.000000e+00 : f32
      %16 = vector.broadcast %cst_11 : f32 to vector<4x1xf32>
      %c0_12 = arith.constant 0 : index
      %c0_13 = arith.constant 0 : index
      %17 = vector.load %arg8[%c0_12, %c0_13] : memref<4x1xf32, #tpu.memory_space<vmem>>, vector<4x1xf32>
      tpu.vector_store %arg8[%c0_12, %c0_13], %16 {strides = array<i32>} : memref<4x1xf32, #tpu.memory_space<vmem>>, vector<4x1xf32>,
      %cst_14 = arith.constant 0.000000e+00 : f32
      %18 = vector.broadcast %cst_14 : f32 to vector<4x1xf32>
      %c0_15 = arith.constant 0 : index
      %c0_16 = arith.constant 0 : index
      %19 = vector.load %arg9[%c0_15, %c0_16] : memref<4x1xf32, #tpu.memory_space<vmem>>, vector<4x1xf32>
      tpu.vector_store %arg9[%c0_15, %c0_16], %18 {strides = array<i32>} : memref<4x1xf32, #tpu.memory_space<vmem>>, vector<4x1xf32>,
      %cst_17 = arith.constant 0.000000e+00 : f32
      %20 = vector.broadcast %cst_17 : f32 to vector<4x1xf32>
      %c0_18 = arith.constant 0 : index
      %c0_19 = arith.constant 0 : index
      %21 = vector.load %arg10[%c0_18, %c0_19] : memref<4x1xf32, #tpu.memory_space<vmem>>, vector<4x1xf32>
      tpu.vector_store %arg10[%c0_18, %c0_19], %20 {strides = array<i32>} : memref<4x1xf32, #tpu.memory_space<vmem>>, vector<4x1xf32>,
      %cst_20 = arith.constant 0.000000e+00 : f32
      %22 = vector.broadcast %cst_20 : f32 to vector<4x1xf32>
      %c0_21 = arith.constant 0 : index
      %c0_22 = arith.constant 0 : index
      %23 = vector.load %arg11[%c0_21, %c0_22] : memref<4x1xf32, #tpu.memory_space<vmem>>, vector<4x1xf32>
      tpu.vector_store %arg11[%c0_21, %c0_22], %22 {strides = array<i32>} : memref<4x1xf32, #tpu.memory_space<vmem>>, vector<4x1xf32>,
      %cst_23 = arith.constant 0.000000e+00 : f32
      %24 = vector.broadcast %cst_23 : f32 to vector<4x1xf32>
      %c0_24 = arith.constant 0 : index
      %c0_25 = arith.constant 0 : index
      %25 = vector.load %arg12[%c0_24, %c0_25] : memref<4x1xf32, #tpu.memory_space<vmem>>, vector<4x1xf32>
      tpu.vector_store %arg12[%c0_24, %c0_25], %24 {strides = array<i32>} : memref<4x1xf32, #tpu.memory_space<vmem>>, vector<4x1xf32>,
    } else {
    }
    %c0_i32_1 = arith.constant 0 : i32
    %3 = arith.cmpi slt, %arg0, %c0_i32_1 : i32
    %4 = arith.extui %3 : i1 to i32
    %c0_i32_2 = arith.constant 0 : i32
    %5 = arith.cmpi ne, %4, %c0_i32_2 : i32
    scf.if %5 {
      %c0 = arith.constant 0 : index
      %c0_7 = arith.constant 0 : index
      %12 = vector.load %arg4[%c0, %c0_7] : memref<4x1280xf32, #tpu.memory_space<vmem>>, vector<4x1280xf32>
      %c0_8 = arith.constant 0 : index
      %c0_9 = arith.constant 0 : index
      %13 = vector.load %arg1[%c0_8, %c0_9] : memref<4x1280xf32, #tpu.memory_space<vmem>>, vector<4x1280xf32>
      %c0_10 = arith.constant 0 : index
      %c0_11 = arith.constant 0 : index
      %14 = vector.load %arg2[%c0_10, %c0_11] : memref<4x1280xf32, #tpu.memory_space<vmem>>, vector<4x1280xf32>
      %c0_12 = arith.constant 0 : index
      %c0_13 = arith.constant 0 : index
      %15 = vector.load %arg3[%c0_12, %c0_13] : memref<4x1280xf32, #tpu.memory_space<vmem>>, vector<4x1280xf32>
      %c0_14 = arith.constant 0 : index
      %c0_15 = arith.constant 0 : index
      %16 = vector.load %arg6[%c0_14, %c0_15] : memref<4x1xf32, #tpu.memory_space<vmem>>, vector<4x1xf32>
      %17 = arith.mulf %12, %12 : vector<4x1280xf32>
      %cst = arith.constant dense<0.000000e+00> : vector<4xf32>
      %18 = vector.multi_reduction <add>, %17, %cst [1] : vector<4x1280xf32> to vector<4xf32>
      %19 = vector.shape_cast %18 : vector<4xf32> to vector<4x1xf32>
      %20 = arith.addf %16, %19 : vector<4x1xf32>
      %c0_16 = arith.constant 0 : index
      %c0_17 = arith.constant 0 : index
      %21 = vector.load %arg6[%c0_16, %c0_17] : memref<4x1xf32, #tpu.memory_space<vmem>>, vector<4x1xf32>
      tpu.vector_store %arg6[%c0_16, %c0_17], %20 {strides = array<i32>} : memref<4x1xf32, #tpu.memory_space<vmem>>, vector<4x1xf32>,
      %c0_18 = arith.constant 0 : index
      %c0_19 = arith.constant 0 : index
      %22 = vector.load %arg7[%c0_18, %c0_19] : memref<4x1xf32, #tpu.memory_space<vmem>>, vector<4x1xf32>
      %23 = arith.mulf %13, %12 : vector<4x1280xf32>
      %cst_20 = arith.constant dense<0.000000e+00> : vector<4xf32>
      %24 = vector.multi_reduction <add>, %23, %cst_20 [1] : vector<4x1280xf32> to vector<4xf32>
      %25 = vector.shape_cast %24 : vector<4xf32> to vector<4x1xf32>
      %26 = arith.addf %22, %25 : vector<4x1xf32>
      %c0_21 = arith.constant 0 : index
      %c0_22 = arith.constant 0 : index
      %27 = vector.load %arg7[%c0_21, %c0_22] : memref<4x1xf32, #tpu.memory_space<vmem>>, vector<4x1xf32>
      tpu.vector_store %arg7[%c0_21, %c0_22], %26 {strides = array<i32>} : memref<4x1xf32, #tpu.memory_space<vmem>>, vector<4x1xf32>,
      %c0_23 = arith.constant 0 : index
      %c0_24 = arith.constant 0 : index
      %28 = vector.load %arg8[%c0_23, %c0_24] : memref<4x1xf32, #tpu.memory_space<vmem>>, vector<4x1xf32>
      %29 = arith.mulf %13, %13 : vector<4x1280xf32>
      %cst_25 = arith.constant dense<0.000000e+00> : vector<4xf32>
      %30 = vector.multi_reduction <add>, %29, %cst_25 [1] : vector<4x1280xf32> to vector<4xf32>
      %31 = vector.shape_cast %30 : vector<4xf32> to vector<4x1xf32>
      %32 = arith.addf %28, %31 : vector<4x1xf32>
      %c0_26 = arith.constant 0 : index
      %c0_27 = arith.constant 0 : index
      %33 = vector.load %arg8[%c0_26, %c0_27] : memref<4x1xf32, #tpu.memory_space<vmem>>, vector<4x1xf32>
      tpu.vector_store %arg8[%c0_26, %c0_27], %32 {strides = array<i32>} : memref<4x1xf32, #tpu.memory_space<vmem>>, vector<4x1xf32>,
      %c0_28 = arith.constant 0 : index
      %c0_29 = arith.constant 0 : index
      %34 = vector.load %arg9[%c0_28, %c0_29] : memref<4x1xf32, #tpu.memory_space<vmem>>, vector<4x1xf32>
      %35 = arith.mulf %14, %12 : vector<4x1280xf32>
      %cst_30 = arith.constant dense<0.000000e+00> : vector<4xf32>
      %36 = vector.multi_reduction <add>, %35, %cst_30 [1] : vector<4x1280xf32> to vector<4xf32>
      %37 = vector.shape_cast %36 : vector<4xf32> to vector<4x1xf32>
      %38 = arith.addf %34, %37 : vector<4x1xf32>
      %c0_31 = arith.constant 0 : index
      %c0_32 = arith.constant 0 : index
      %39 = vector.load %arg9[%c0_31, %c0_32] : memref<4x1xf32, #tpu.memory_space<vmem>>, vector<4x1xf32>
      tpu.vector_store %arg9[%c0_31, %c0_32], %38 {strides = array<i32>} : memref<4x1xf32, #tpu.memory_space<vmem>>, vector<4x1xf32>,
      %c0_33 = arith.constant 0 : index
      %c0_34 = arith.constant 0 : index
      %40 = vector.load %arg10[%c0_33, %c0_34] : memref<4x1xf32, #tpu.memory_space<vmem>>, vector<4x1xf32>
      %41 = arith.mulf %14, %14 : vector<4x1280xf32>
      %cst_35 = arith.constant dense<0.000000e+00> : vector<4xf32>
      %42 = vector.multi_reduction <add>, %41, %cst_35 [1] : vector<4x1280xf32> to vector<4xf32>
      %43 = vector.shape_cast %42 : vector<4xf32> to vector<4x1xf32>
      %44 = arith.addf %40, %43 : vector<4x1xf32>
      %c0_36 = arith.constant 0 : index
      %c0_37 = arith.constant 0 : index
      %45 = vector.load %arg10[%c0_36, %c0_37] : memref<4x1xf32, #tpu.memory_space<vmem>>, vector<4x1xf32>
      tpu.vector_store %arg10[%c0_36, %c0_37], %44 {strides = array<i32>} : memref<4x1xf32, #tpu.memory_space<vmem>>, vector<4x1xf32>,
      %c0_38 = arith.constant 0 : index
      %c0_39 = arith.constant 0 : index
      %46 = vector.load %arg11[%c0_38, %c0_39] : memref<4x1xf32, #tpu.memory_space<vmem>>, vector<4x1xf32>
      %47 = arith.mulf %15, %12 : vector<4x1280xf32>
      %cst_40 = arith.constant dense<0.000000e+00> : vector<4xf32>
      %48 = vector.multi_reduction <add>, %47, %cst_40 [1] : vector<4x1280xf32> to vector<4xf32>
      %49 = vector.shape_cast %48 : vector<4xf32> to vector<4x1xf32>
      %50 = arith.addf %46, %49 : vector<4x1xf32>
      %c0_41 = arith.constant 0 : index
      %c0_42 = arith.constant 0 : index
      %51 = vector.load %arg11[%c0_41, %c0_42] : memref<4x1xf32, #tpu.memory_space<vmem>>, vector<4x1xf32>
      tpu.vector_store %arg11[%c0_41, %c0_42], %50 {strides = array<i32>} : memref<4x1xf32, #tpu.memory_space<vmem>>, vector<4x1xf32>,
      %c0_43 = arith.constant 0 : index
      %c0_44 = arith.constant 0 : index
      %52 = vector.load %arg12[%c0_43, %c0_44] : memref<4x1xf32, #tpu.memory_space<vmem>>, vector<4x1xf32>
      %53 = arith.mulf %15, %15 : vector<4x1280xf32>
      %cst_45 = arith.constant dense<0.000000e+00> : vector<4xf32>
      %54 = vector.multi_reduction <add>, %53, %cst_45 [1] : vector<4x1280xf32> to vector<4xf32>
      %55 = vector.shape_cast %54 : vector<4xf32> to vector<4x1xf32>
      %56 = arith.addf %52, %55 : vector<4x1xf32>
      %c0_46 = arith.constant 0 : index
      %c0_47 = arith.constant 0 : index
      %57 = vector.load %arg12[%c0_46, %c0_47] : memref<4x1xf32, #tpu.memory_space<vmem>>, vector<4x1xf32>
      tpu.vector_store %arg12[%c0_46, %c0_47], %56 {strides = array<i32>} : memref<4x1xf32, #tpu.memory_space<vmem>>, vector<4x1xf32>,
    } else {
    }
    %c0_i32_3 = arith.constant 0 : i32
    %6 = arith.cmpi eq, %arg0, %c0_i32_3 : i32
    %7 = arith.extui %6 : i1 to i32
    %c0_i32_4 = arith.constant 0 : i32
    %8 = arith.cmpi ne, %7, %c0_i32_4 : i32
    scf.if %8 {
      %12 = tpu.iota {dimensions = array<i32: 1>} : vector<4x1280xi32>
      %c1219_i32 = arith.constant 1219 : i32
      %13 = vector.broadcast %c1219_i32 : i32 to vector<4x1280xi32>
      %14 = arith.cmpi slt, %12, %13 : vector<4x1280xi32>
      %c0 = arith.constant 0 : index
      %c0_7 = arith.constant 0 : index
      %15 = vector.load %arg4[%c0, %c0_7] : memref<4x1280xf32, #tpu.memory_space<vmem>>, vector<4x1280xf32>
      %cst = arith.constant 0.000000e+00 : f32
      %16 = vector.broadcast %cst : f32 to vector<4x1280xf32>
      %17 = arith.select %14, %15, %16 : vector<4x1280xi1>, vector<4x1280xf32>
      %c0_8 = arith.constant 0 : index
      %c0_9 = arith.constant 0 : index
      %18 = vector.load %arg1[%c0_8, %c0_9] : memref<4x1280xf32, #tpu.memory_space<vmem>>, vector<4x1280xf32>
      %cst_10 = arith.constant 0.000000e+00 : f32
      %19 = vector.broadcast %cst_10 : f32 to vector<4x1280xf32>
      %20 = arith.select %14, %18, %19 : vector<4x1280xi1>, vector<4x1280xf32>
      %c0_11 = arith.constant 0 : index
      %c0_12 = arith.constant 0 : index
      %21 = vector.load %arg2[%c0_11, %c0_12] : memref<4x1280xf32, #tpu.memory_space<vmem>>, vector<4x1280xf32>
      %cst_13 = arith.constant 0.000000e+00 : f32
      %22 = vector.broadcast %cst_13 : f32 to vector<4x1280xf32>
      %23 = arith.select %14, %21, %22 : vector<4x1280xi1>, vector<4x1280xf32>
      %c0_14 = arith.constant 0 : index
      %c0_15 = arith.constant 0 : index
      %24 = vector.load %arg3[%c0_14, %c0_15] : memref<4x1280xf32, #tpu.memory_space<vmem>>, vector<4x1280xf32>
      %cst_16 = arith.constant 0.000000e+00 : f32
      %25 = vector.broadcast %cst_16 : f32 to vector<4x1280xf32>
      %26 = arith.select %14, %24, %25 : vector<4x1280xi1>, vector<4x1280xf32>
      %c0_17 = arith.constant 0 : index
      %c0_18 = arith.constant 0 : index
      %27 = vector.load %arg6[%c0_17, %c0_18] : memref<4x1xf32, #tpu.memory_space<vmem>>, vector<4x1xf32>
      %28 = arith.mulf %17, %17 : vector<4x1280xf32>
      %cst_19 = arith.constant dense<0.000000e+00> : vector<4xf32>
      %29 = vector.multi_reduction <add>, %28, %cst_19 [1] : vector<4x1280xf32> to vector<4xf32>
      %30 = vector.shape_cast %29 : vector<4xf32> to vector<4x1xf32>
      %31 = arith.addf %27, %30 : vector<4x1xf32>
      %c0_20 = arith.constant 0 : index
      %c0_21 = arith.constant 0 : index
      %32 = vector.load %arg6[%c0_20, %c0_21] : memref<4x1xf32, #tpu.memory_space<vmem>>, vector<4x1xf32>
      tpu.vector_store %arg6[%c0_20, %c0_21], %31 {strides = array<i32>} : memref<4x1xf32, #tpu.memory_space<vmem>>, vector<4x1xf32>,
      %c0_22 = arith.constant 0 : index
      %c0_23 = arith.constant 0 : index
      %33 = vector.load %arg7[%c0_22, %c0_23] : memref<4x1xf32, #tpu.memory_space<vmem>>, vector<4x1xf32>
      %34 = arith.mulf %20, %17 : vector<4x1280xf32>
      %cst_24 = arith.constant dense<0.000000e+00> : vector<4xf32>
      %35 = vector.multi_reduction <add>, %34, %cst_24 [1] : vector<4x1280xf32> to vector<4xf32>
      %36 = vector.shape_cast %35 : vector<4xf32> to vector<4x1xf32>
      %37 = arith.addf %33, %36 : vector<4x1xf32>
      %c0_25 = arith.constant 0 : index
      %c0_26 = arith.constant 0 : index
      %38 = vector.load %arg7[%c0_25, %c0_26] : memref<4x1xf32, #tpu.memory_space<vmem>>, vector<4x1xf32>
      tpu.vector_store %arg7[%c0_25, %c0_26], %37 {strides = array<i32>} : memref<4x1xf32, #tpu.memory_space<vmem>>, vector<4x1xf32>,
      %c0_27 = arith.constant 0 : index
      %c0_28 = arith.constant 0 : index
      %39 = vector.load %arg8[%c0_27, %c0_28] : memref<4x1xf32, #tpu.memory_space<vmem>>, vector<4x1xf32>
      %40 = arith.mulf %20, %20 : vector<4x1280xf32>
      %cst_29 = arith.constant dense<0.000000e+00> : vector<4xf32>
      %41 = vector.multi_reduction <add>, %40, %cst_29 [1] : vector<4x1280xf32> to vector<4xf32>
      %42 = vector.shape_cast %41 : vector<4xf32> to vector<4x1xf32>
      %43 = arith.addf %39, %42 : vector<4x1xf32>
      %c0_30 = arith.constant 0 : index
      %c0_31 = arith.constant 0 : index
      %44 = vector.load %arg8[%c0_30, %c0_31] : memref<4x1xf32, #tpu.memory_space<vmem>>, vector<4x1xf32>
      tpu.vector_store %arg8[%c0_30, %c0_31], %43 {strides = array<i32>} : memref<4x1xf32, #tpu.memory_space<vmem>>, vector<4x1xf32>,
      %c0_32 = arith.constant 0 : index
      %c0_33 = arith.constant 0 : index
      %45 = vector.load %arg9[%c0_32, %c0_33] : memref<4x1xf32, #tpu.memory_space<vmem>>, vector<4x1xf32>
      %46 = arith.mulf %23, %17 : vector<4x1280xf32>
      %cst_34 = arith.constant dense<0.000000e+00> : vector<4xf32>
      %47 = vector.multi_reduction <add>, %46, %cst_34 [1] : vector<4x1280xf32> to vector<4xf32>
      %48 = vector.shape_cast %47 : vector<4xf32> to vector<4x1xf32>
      %49 = arith.addf %45, %48 : vector<4x1xf32>
      %c0_35 = arith.constant 0 : index
      %c0_36 = arith.constant 0 : index
      %50 = vector.load %arg9[%c0_35, %c0_36] : memref<4x1xf32, #tpu.memory_space<vmem>>, vector<4x1xf32>
      tpu.vector_store %arg9[%c0_35, %c0_36], %49 {strides = array<i32>} : memref<4x1xf32, #tpu.memory_space<vmem>>, vector<4x1xf32>,
      %c0_37 = arith.constant 0 : index
      %c0_38 = arith.constant 0 : index
      %51 = vector.load %arg10[%c0_37, %c0_38] : memref<4x1xf32, #tpu.memory_space<vmem>>, vector<4x1xf32>
      %52 = arith.mulf %23, %23 : vector<4x1280xf32>
      %cst_39 = arith.constant dense<0.000000e+00> : vector<4xf32>
      %53 = vector.multi_reduction <add>, %52, %cst_39 [1] : vector<4x1280xf32> to vector<4xf32>
      %54 = vector.shape_cast %53 : vector<4xf32> to vector<4x1xf32>
      %55 = arith.addf %51, %54 : vector<4x1xf32>
      %c0_40 = arith.constant 0 : index
      %c0_41 = arith.constant 0 : index
      %56 = vector.load %arg10[%c0_40, %c0_41] : memref<4x1xf32, #tpu.memory_space<vmem>>, vector<4x1xf32>
      tpu.vector_store %arg10[%c0_40, %c0_41], %55 {strides = array<i32>} : memref<4x1xf32, #tpu.memory_space<vmem>>, vector<4x1xf32>,
      %c0_42 = arith.constant 0 : index
      %c0_43 = arith.constant 0 : index
      %57 = vector.load %arg11[%c0_42, %c0_43] : memref<4x1xf32, #tpu.memory_space<vmem>>, vector<4x1xf32>
      %58 = arith.mulf %26, %17 : vector<4x1280xf32>
      %cst_44 = arith.constant dense<0.000000e+00> : vector<4xf32>
      %59 = vector.multi_reduction <add>, %58, %cst_44 [1] : vector<4x1280xf32> to vector<4xf32>
      %60 = vector.shape_cast %59 : vector<4xf32> to vector<4x1xf32>
      %61 = arith.addf %57, %60 : vector<4x1xf32>
      %c0_45 = arith.constant 0 : index
      %c0_46 = arith.constant 0 : index
      %62 = vector.load %arg11[%c0_45, %c0_46] : memref<4x1xf32, #tpu.memory_space<vmem>>, vector<4x1xf32>
      tpu.vector_store %arg11[%c0_45, %c0_46], %61 {strides = array<i32>} : memref<4x1xf32, #tpu.memory_space<vmem>>, vector<4x1xf32>,
      %c0_47 = arith.constant 0 : index
      %c0_48 = arith.constant 0 : index
      %63 = vector.load %arg12[%c0_47, %c0_48] : memref<4x1xf32, #tpu.memory_space<vmem>>, vector<4x1xf32>
      %64 = arith.mulf %26, %26 : vector<4x1280xf32>
      %cst_49 = arith.constant dense<0.000000e+00> : vector<4xf32>
      %65 = vector.multi_reduction <add>, %64, %cst_49 [1] : vector<4x1280xf32> to vector<4xf32>
      %66 = vector.shape_cast %65 : vector<4xf32> to vector<4x1xf32>
      %67 = arith.addf %63, %66 : vector<4x1xf32>
      %c0_50 = arith.constant 0 : index
      %c0_51 = arith.constant 0 : index
      %68 = vector.load %arg12[%c0_50, %c0_51] : memref<4x1xf32, #tpu.memory_space<vmem>>, vector<4x1xf32>
      tpu.vector_store %arg12[%c0_50, %c0_51], %67 {strides = array<i32>} : memref<4x1xf32, #tpu.memory_space<vmem>>, vector<4x1xf32>,
    } else {
    }
    %c0_i32_5 = arith.constant 0 : i32
    %9 = arith.cmpi eq, %arg0, %c0_i32_5 : i32
    %10 = arith.extui %9 : i1 to i32
    %c0_i32_6 = arith.constant 0 : i32
    %11 = arith.cmpi ne, %10, %c0_i32_6 : i32
    scf.if %11 {
      %c0 = arith.constant 0 : index
      %c0_7 = arith.constant 0 : index
      %12 = vector.load %arg6[%c0, %c0_7] : memref<4x1xf32, #tpu.memory_space<vmem>>, vector<4x1xf32>
      %c0_8 = arith.constant 0 : index
      %c0_9 = arith.constant 0 : index
      %13 = vector.load %arg7[%c0_8, %c0_9] : memref<4x1xf32, #tpu.memory_space<vmem>>, vector<4x1xf32>
      %c0_10 = arith.constant 0 : index
      %c0_11 = arith.constant 0 : index
      %14 = vector.load %arg8[%c0_10, %c0_11] : memref<4x1xf32, #tpu.memory_space<vmem>>, vector<4x1xf32>
      %cst = arith.constant 1.1920929E-7 : f32
      %15 = vector.broadcast %cst : f32 to vector<4x1xf32>
      %16 = arith.addf %13, %15 : vector<4x1xf32>
      %cst_12 = arith.constant 1.1920929E-7 : f32
      %17 = vector.broadcast %cst_12 : f32 to vector<4x1xf32>
      %18 = arith.addf %12, %17 : vector<4x1xf32>
      %19 = arith.divf %16, %18 : vector<4x1xf32>
      %20 = arith.mulf %19, %19 : vector<4x1xf32>
      %21 = arith.mulf %20, %12 : vector<4x1xf32>
      %cst_13 = arith.constant 1.1920929E-7 : f32
      %22 = vector.broadcast %cst_13 : f32 to vector<4x1xf32>
      %23 = arith.addf %21, %22 : vector<4x1xf32>
      %cst_14 = arith.constant 2.000000e+00 : f32
      %24 = vector.broadcast %cst_14 : f32 to vector<4x1xf32>
      %25 = arith.mulf %24, %19 : vector<4x1xf32>
      %26 = arith.mulf %25, %13 : vector<4x1xf32>
      %27 = arith.subf %14, %26 : vector<4x1xf32>
      %28 = arith.addf %27, %21 : vector<4x1xf32>
      %cst_15 = arith.constant 0.000000e+00 : f32
      %29 = vector.broadcast %cst_15 : f32 to vector<4x1xf32>
      %30 = arith.maximumf %28, %29 : vector<4x1xf32>
      %cst_16 = arith.constant 1.1920929E-7 : f32
      %31 = vector.broadcast %cst_16 : f32 to vector<4x1xf32>
      %32 = arith.addf %30, %31 : vector<4x1xf32>
      %33 = arith.divf %23, %32 : vector<4x1xf32>
      %34 = math.log %33 : vector<4x1xf32>
      %cst_17 = arith.constant 0.434294492 : f32
      %35 = vector.broadcast %cst_17 : f32 to vector<4x1xf32>
      %36 = arith.mulf %34, %35 : vector<4x1xf32>
      %cst_18 = arith.constant 1.000000e+01 : f32
      %37 = vector.broadcast %cst_18 : f32 to vector<4x1xf32>
      %38 = arith.mulf %37, %36 : vector<4x1xf32>
      %c0_19 = arith.constant 0 : index
      %c0_20 = arith.constant 0 : index
      %39 = vector.load %arg9[%c0_19, %c0_20] : memref<4x1xf32, #tpu.memory_space<vmem>>, vector<4x1xf32>
      %c0_21 = arith.constant 0 : index
      %c0_22 = arith.constant 0 : index
      %40 = vector.load %arg10[%c0_21, %c0_22] : memref<4x1xf32, #tpu.memory_space<vmem>>, vector<4x1xf32>
      %cst_23 = arith.constant 1.1920929E-7 : f32
      %41 = vector.broadcast %cst_23 : f32 to vector<4x1xf32>
      %42 = arith.addf %39, %41 : vector<4x1xf32>
      %cst_24 = arith.constant 1.1920929E-7 : f32
      %43 = vector.broadcast %cst_24 : f32 to vector<4x1xf32>
      %44 = arith.addf %12, %43 : vector<4x1xf32>
      %45 = arith.divf %42, %44 : vector<4x1xf32>
      %46 = arith.mulf %45, %45 : vector<4x1xf32>
      %47 = arith.mulf %46, %12 : vector<4x1xf32>
      %cst_25 = arith.constant 1.1920929E-7 : f32
      %48 = vector.broadcast %cst_25 : f32 to vector<4x1xf32>
      %49 = arith.addf %47, %48 : vector<4x1xf32>
      %cst_26 = arith.constant 2.000000e+00 : f32
      %50 = vector.broadcast %cst_26 : f32 to vector<4x1xf32>
      %51 = arith.mulf %50, %45 : vector<4x1xf32>
      %52 = arith.mulf %51, %39 : vector<4x1xf32>
      %53 = arith.subf %40, %52 : vector<4x1xf32>
      %54 = arith.addf %53, %47 : vector<4x1xf32>
      %cst_27 = arith.constant 0.000000e+00 : f32
      %55 = vector.broadcast %cst_27 : f32 to vector<4x1xf32>
      %56 = arith.maximumf %54, %55 : vector<4x1xf32>
      %cst_28 = arith.constant 1.1920929E-7 : f32
      %57 = vector.broadcast %cst_28 : f32 to vector<4x1xf32>
      %58 = arith.addf %56, %57 : vector<4x1xf32>
      %59 = arith.divf %49, %58 : vector<4x1xf32>
      %60 = math.log %59 : vector<4x1xf32>
      %cst_29 = arith.constant 0.434294492 : f32
      %61 = vector.broadcast %cst_29 : f32 to vector<4x1xf32>
      %62 = arith.mulf %60, %61 : vector<4x1xf32>
      %cst_30 = arith.constant 1.000000e+01 : f32
      %63 = vector.broadcast %cst_30 : f32 to vector<4x1xf32>
      %64 = arith.mulf %63, %62 : vector<4x1xf32>
      %c0_31 = arith.constant 0 : index
      %c0_32 = arith.constant 0 : index
      %65 = vector.load %arg11[%c0_31, %c0_32] : memref<4x1xf32, #tpu.memory_space<vmem>>, vector<4x1xf32>
      %c0_33 = arith.constant 0 : index
      %c0_34 = arith.constant 0 : index
      %66 = vector.load %arg12[%c0_33, %c0_34] : memref<4x1xf32, #tpu.memory_space<vmem>>, vector<4x1xf32>
      %cst_35 = arith.constant 1.1920929E-7 : f32
      %67 = vector.broadcast %cst_35 : f32 to vector<4x1xf32>
      %68 = arith.addf %65, %67 : vector<4x1xf32>
      %cst_36 = arith.constant 1.1920929E-7 : f32
      %69 = vector.broadcast %cst_36 : f32 to vector<4x1xf32>
      %70 = arith.addf %12, %69 : vector<4x1xf32>
      %71 = arith.divf %68, %70 : vector<4x1xf32>
      %72 = arith.mulf %71, %71 : vector<4x1xf32>
      %73 = arith.mulf %72, %12 : vector<4x1xf32>
      %cst_37 = arith.constant 1.1920929E-7 : f32
      %74 = vector.broadcast %cst_37 : f32 to vector<4x1xf32>
      %75 = arith.addf %73, %74 : vector<4x1xf32>
      %cst_38 = arith.constant 2.000000e+00 : f32
      %76 = vector.broadcast %cst_38 : f32 to vector<4x1xf32>
      %77 = arith.mulf %76, %71 : vector<4x1xf32>
      %78 = arith.mulf %77, %65 : vector<4x1xf32>
      %79 = arith.subf %66, %78 : vector<4x1xf32>
      %80 = arith.addf %79, %73 : vector<4x1xf32>
      %cst_39 = arith.constant 0.000000e+00 : f32
      %81 = vector.broadcast %cst_39 : f32 to vector<4x1xf32>
      %82 = arith.maximumf %80, %81 : vector<4x1xf32>
      %cst_40 = arith.constant 1.1920929E-7 : f32
      %83 = vector.broadcast %cst_40 : f32 to vector<4x1xf32>
      %84 = arith.addf %82, %83 : vector<4x1xf32>
      %85 = arith.divf %75, %84 : vector<4x1xf32>
      %86 = math.log %85 : vector<4x1xf32>
      %cst_41 = arith.constant 0.434294492 : f32
      %87 = vector.broadcast %cst_41 : f32 to vector<4x1xf32>
      %88 = arith.mulf %86, %87 : vector<4x1xf32>
      %cst_42 = arith.constant 1.000000e+01 : f32
      %89 = vector.broadcast %cst_42 : f32 to vector<4x1xf32>
      %90 = arith.mulf %89, %88 : vector<4x1xf32>
      %cst_43 = arith.constant -1.600000e+00 : f32
      %91 = vector.broadcast %cst_43 : f32 to vector<4x1xf32>
      %92 = arith.mulf %91, %38 : vector<4x1xf32>
      %cst_44 = arith.constant -2.000000e-01 : f32
      %93 = vector.broadcast %cst_44 : f32 to vector<4x1xf32>
      %94 = arith.mulf %93, %64 : vector<4x1xf32>
      %95 = arith.addf %92, %94 : vector<4x1xf32>
      %cst_45 = arith.constant -2.000000e-01 : f32
      %96 = vector.broadcast %cst_45 : f32 to vector<4x1xf32>
      %97 = arith.mulf %96, %90 : vector<4x1xf32>
      %98 = arith.addf %95, %97 : vector<4x1xf32>
      %cst_46 = arith.constant dense<0.000000e+00> : vector<1xf32>
      %99 = vector.multi_reduction <add>, %98, %cst_46 [0] : vector<4x1xf32> to vector<1xf32>
      %100 = vector.shape_cast %99 : vector<1xf32> to vector<1x1xf32>
      %cst_47 = arith.constant 4.000000e+00 : f32
      %101 = vector.broadcast %cst_47 : f32 to vector<1x1xf32>
      %102 = arith.divf %100, %101 : vector<1x1xf32>
      %c0_48 = arith.constant 0 : index
      %c0_49 = arith.constant 0 : index
      %103 = vector.load %arg5[%c0_48, %c0_49] : memref<1x1xf32, #tpu.memory_space<vmem>>, vector<1x1xf32>
      tpu.vector_store %arg5[%c0_48, %c0_49], %102 {strides = array<i32>} : memref<1x1xf32, #tpu.memory_space<vmem>>, vector<1x1xf32>,
    } else {
    }
    return
  }
  func.func @transform_0(%arg0: i32) -> (i32, i32) {
    %c0_i32 = arith.constant 0 : i32
    %c0_i32_0 = arith.constant 0 : i32
    return %c0_i32, %arg0 : i32, i32
  }
  func.func @transform_1(%arg0: i32) -> (i32, i32) {
    %c0_i32 = arith.constant 0 : i32
    %c0_i32_0 = arith.constant 0 : i32
    return %c0_i32, %arg0 : i32, i32
  }
  func.func @transform_2(%arg0: i32) -> (i32, i32) {
    %c0_i32 = arith.constant 0 : i32
    %c0_i32_0 = arith.constant 0 : i32
    return %c0_i32, %arg0 : i32, i32
  }
  func.func @transform_3(%arg0: i32) -> (i32, i32) {
    %c0_i32 = arith.constant 0 : i32
    %c0_i32_0 = arith.constant 0 : i32
    return %c0_i32, %arg0 : i32, i32
  }
  func.func @transform_4(%arg0: i32) -> (i32, i32) {
    %c0_i32 = arith.constant 0 : i32
    %c0_i32_0 = arith.constant 0 : i32
    %c0_i32_1 = arith.constant 0 : i32
    return %c0_i32, %c0_i32_0 : i32, i32
  }
}

</mosaic_0001>

<bundles_post_ra>
// kernel: tpu_custom_call.1
= control target key start
LH: loop header
LB: loop body
LE: loop exit
PB: predicated region body
PF: predicated region fallthrough
CT: control target
= control target key end

     0   :  { %9 = vsyncpa [#allocation10], 0  ;;  %s1543_s0 = inlined_call_operand.hbm [shape: f32[4,1300], index: 0, kind: input, shape index: {}]   ;;  %s1544_s1 = inlined_call_operand.hbm [shape: f32[4,1280], index: 1, kind: input, shape index: {}]   ;;  %s1545_s2 = inlined_call_operand.hbm [shape: f32[4,1250], index: 2, kind: input, shape index: {}]   ;;  %s1546_s3 = inlined_call_operand.hbm [shape: f32[4,1219], index: 3, kind: input, shape index: {}]   ;;  %s1547_s4 = inlined_call_operand.hbm [shape: f32[1,1], index: 4, kind: output, shape index: {}]  }
   0x1   :  { %10 = vsyncpa [#allocation13], 0 }
   0x2   :  { %11 = vsyncpa [#allocation16], 0  ;;  %s29_s17 = sshll.u32 %s1544_s1, 4  ;;  %s30_s17 = int_to_ptr.hbm [resolvable:$true] %s29_s17 }
   0x3   :  { %12 = vsyncpa [#allocation11], 0  ;;  %s1305_s18 = smov [#allocation12]   ;;  %s18_s22 = sshll.u32 %s1543_s0, 4  ;;  %s19_s22 = int_to_ptr.hbm [resolvable:$true] %s18_s22 }
   0x4   :  { %s31_s19 = sshll.u32 %s1305_s18, 4  ;;  %s1306_s23 = smov [#allocation9]   ;;  %s32_s19 = int_to_ptr.vmem [resolvable:$true] %s31_s19 }
   0x5   :  { %34 = dma.hbm_to_vmem [thread:$0]  %s30_s17, 640, %s32_s19, [#allocation13]  }
   0x6   :  { %s20_s24 = sshll.u32 %s1306_s23, 4  ;;  %s40_s27 = sshll.u32 %s1545_s2, 4  ;;  %s21_s24 = int_to_ptr.vmem [resolvable:$true] %s20_s24  ;;  %s41_s27 = int_to_ptr.hbm [resolvable:$true] %s40_s27 }
   0x7   :  { %23 = dma.hbm_to_vmem [thread:$0]  %s19_s22, 640, %s21_s24, [#allocation10]  }
   0x8   :  { %s51_s29 = sshll.u32 %s1546_s3, 4  ;;  %s1307_s30 = smov [#allocation14]   ;;  %s52_s29 = int_to_ptr.hbm [resolvable:$true] %s51_s29 }
   0x9   :  { %s42_s5 = sshll.u32 %s1307_s30, 4  ;;  %s1308_s0 = smov [#allocation15]   ;;  %s43_s5 = int_to_ptr.vmem [resolvable:$true] %s42_s5 }
   0xa   :  { %45 = dma.hbm_to_vmem [thread:$0]  %s41_s27, 640, %s43_s5, [#allocation13]  }
   0xb   :  { %s53_s6 = sshll.u32 %s1308_s0, 4  ;;  %s54_s6 = int_to_ptr.vmem [resolvable:$true] %s53_s6 }
   0xc   :  { %56 = dma.hbm_to_vmem [thread:$0]  %s52_s29, 640, %s54_s6, [#allocation16]  }
   0xd   :  { %1297 = dma.done.wait [#allocation10], 640  }
   0xe   :  { %1298 = vsyncadd [#allocation10], 4294966656 }
   0xf   :  { %1299 = dma.done.wait [#allocation13], 1280  }
  0x10   :  { %1300 = vsyncadd [#allocation13], 4294966016 }
  0x11   :  { %1301 = dma.done.wait [#allocation16], 640  }
  0x12   :  { %1302 = vsyncadd [#allocation16], 4294966656  ;;  %v569_v0 = vld [vmem:[#allocation15] sm:$0xff]  ;;  %v570_v1 = vld [vmem:[#allocation15 + $0x8] sm:$0xff]  ;;  %v548_v4 = vlaneseq  ;;  %vm772_vm0 = vcmask 1043456   ;;  %vm77_vm2 = vcmask 3072  }
  0x13   :  { %v571_v2 = vld [vmem:[#allocation15 + $0x10] sm:$0xff]  ;;  %v572_v3 = vld [vmem:[#allocation15 + $0x18] sm:$0xff]  ;;  %579 = vst [vmem:[#allocation1] ss:$2 sm:$0xff] %v569_v0  ;;  %v573_v6 = vld [vmem:[#allocation15 + $0x20] sm:$0xff]  ;;  %s1311_s2 = smov [#allocation17]  }
  0x14   :  { %581 = vst [vmem:[#allocation1 + $0x10] ss:$2 sm:$0xff] %v570_v1  ;;  %v549_v5 = vand.u32 127, %v548_v4  ;;  %v618_v14 = vld [vmem:[#allocation9 + $0x8] sm:$0xff]  ;;  %v619_v15 = vld [vmem:[#allocation9 + $0x10] sm:$0xff]  ;;  %v620_v20 = vld [vmem:[#allocation9 + $0x18] sm:$0xff] }
  0x15   :  { %583 = vst [vmem:[#allocation1 + $0x20] ss:$2 sm:$0xff] %v571_v2  ;;  %v617_v33 = vld [vmem:[#allocation9] sm:$0xff]  ;;  %v666_v38 = vld [vmem:[#allocation12 + $0x8] sm:$0xff]  ;;  %v667_v39 = vld [vmem:[#allocation12 + $0x10] sm:$0xff]  ;;  %s1140_s3 = sshll.u32 %s1311_s2, 4  ;;  %s1141_s3 = int_to_ptr.vmem [resolvable:$true] %s1140_s3 }
  0x16   :  { %585 = vst [vmem:[#allocation1 + $0x30] ss:$2 sm:$0xff] %v572_v3  ;;  %v1375_v24 = vadd.s32 1152, %v549_v5  ;;  %v668_v46 = vld [vmem:[#allocation12 + $0x18] sm:$0xff]  ;;  %s1142_s9 = sshll.u32 %s1547_s4, 4  ;;  %s1143_s9 = int_to_ptr.hbm [resolvable:$true] %s1142_s9 }
  0x17   :  { %v621_v58 = vld [vmem:[#allocation9 + $0x20] sm:$0xff] }
  0x18   :  { %vm568_vm1 = vcmp.lt.s32.totalorder %v1375_v24, 1219 }
  0x1a   :  { %v1349_v7 = vld.sshfl [vmem:[#allocation1] sm:$0xff pattern:$0x75316420]  ;;  %v1351_v8 = vld.sshfl [vmem:[#allocation1 + $0x8] sm:$0xff pattern:$0x75316420] }
  0x1b   :  { %v1353_v9 = vld.sshfl [vmem:[#allocation1 + $0x10] sm:$0xff pattern:$0x75316420]  ;;  %v1355_v10 = vld.sshfl [vmem:[#allocation1 + $0x18] sm:$0xff pattern:$0x75316420]  ;;  %v762_v11 = vmul.f32 %v1349_v7, %v1349_v7  ;;  %v763_v12 = vmul.f32 %v1351_v8, %v1351_v8 }
  0x1c   :  { %v1361_v13 = vld.sshfl [vmem:[#allocation1 + $0x20] sm:$0xff pattern:$0x75316420]  ;;  %v764_v16 = vmul.f32 %v1353_v9, %v1353_v9  ;;  %v765_v17 = vmul.f32 %v1355_v10, %v1355_v10  ;;  %v1367_v18 = vld.sshfl [vmem:[#allocation1 + $0x28] sm:$0xff pattern:$0x75316420] }
  0x1d   :  { %v1369_v19 = vld.sshfl [vmem:[#allocation1 + $0x30] sm:$0xff pattern:$0x75316420]  ;;  %594 = vst [vmem:[#allocation1] ss:$2 sm:$0xff] %v573_v6  ;;  %v766_v21 = vmul.f32 %v1361_v13, %v1361_v13  ;;  %v773_v22 = vsel %vm772_vm0, %v762_v11, 0.0  ;;  %v767_v28 = vmul.f32 %v1367_v18, %v1367_v18 }
  0x1e   :  { %v774_v23 = vsel %vm772_vm0, %v763_v12, 0.0  ;;  %629 = vst [vmem:[#allocation1 + $0x10] ss:$2 sm:$0xff] %v618_v14  ;;  %v776_v26 = vsel %vm772_vm0, %v764_v16, 0.0  ;;  %v768_v29 = vmul.f32 %v1369_v19, %v1369_v19  ;;  %v778_v30 = vsel %vm772_vm0, %v765_v17, 0.0 }
  0x1f   :  { %v775_v25 = vadd.f32 %v774_v23, %v773_v22  ;;  %v1378_v27 = vld.sshfl [vmem:[#allocation1 + $0x38] sm:$0xff pattern:$0x75316420]  ;;  %631 = vst [vmem:[#allocation1 + $0x20] ss:$2 sm:$0xff] %v619_v15  ;;  %v780_v32 = vsel %vm772_vm0, %v766_v21, 0.0 }
  0x20   :  { %633 = vst [vmem:[#allocation1 + $0x30] ss:$2 sm:$0xff] %v620_v20  ;;  %v769_v35 = vmul.f32 %v1378_v27, %v1378_v27  ;;  %v782_v36 = vsel %vm772_vm0, %v767_v28, 0.0  ;;  %v784_v37 = vsel %vm772_vm0, %v768_v29, 0.0 }
  0x21   :  { %v777_v31 = vadd.f32 %v776_v26, %v775_v25 }
  0x22   :  { %v786_v51 = vsel %vm772_vm0, %v769_v35, 0.0 }
  0x23   :  { %v779_v34 = vadd.f32 %v778_v30, %v777_v31  ;;  %v714_v30 = vld [vmem:[#allocation14 + $0x8] sm:$0xff]  ;;  %v665_v31 = vld [vmem:[#allocation12] sm:$0xff] }
  0x24   :  { %v1391_v40 = vld.sshfl [vmem:[#allocation1] sm:$0xff pattern:$0x75316420]  ;;  %v596_v41 = vld.sshfl [vmem:[#allocation1 + $0x8] sm:$0xff pattern:$0x75316420] }
  0x25   :  { %v781_v42 = vadd.f32 %v780_v32, %v779_v34  ;;  %v1395_v43 = vsel %vm568_vm1, %v596_v41, 0.0  ;;  %v770_v44 = vmul.f32 %v1391_v40, %v1391_v40  ;;  %627 = vst [vmem:[#allocation1] ss:$2 sm:$0xff] %v617_v33  ;;  %v636_v45 = vld.sshfl [vmem:[#allocation1 + $0x10] sm:$0xff pattern:$0x75316420] }
  0x26   :  { %v637_v48 = vld.sshfl [vmem:[#allocation1 + $0x18] sm:$0xff pattern:$0x75316420]  ;;  %v638_v49 = vld.sshfl [vmem:[#allocation1 + $0x20] sm:$0xff pattern:$0x75316420]  ;;  %v771_v50 = vmul.f32 %v1395_v43, %v1395_v43  ;;  %v800_v59 = vmul.f32 %v636_v45, %v1353_v9  ;;  %v834_v62 = vmul.f32 %v636_v45, %v636_v45 }
  0x27   :  { %v783_v47 = vadd.f32 %v782_v36, %v781_v42  ;;  %v639_v52 = vld.sshfl [vmem:[#allocation1 + $0x28] sm:$0xff pattern:$0x75316420]  ;;  %677 = vst [vmem:[#allocation1 + $0x10] ss:$2 sm:$0xff] %v666_v38  ;;  %v788_v54 = vsel %vm772_vm0, %v770_v44, 0.0  ;;  %v801_v61 = vmul.f32 %v637_v48, %v1355_v10  ;;  %v802_v2 = vmul.f32 %v638_v49, %v1361_v13 }
  0x28   :  { %679 = vst [vmem:[#allocation1 + $0x20] ss:$2 sm:$0xff] %v667_v39  ;;  %v640_v55 = vld.sshfl [vmem:[#allocation1 + $0x30] sm:$0xff pattern:$0x75316420]  ;;  %v790_v60 = vsel %vm772_vm0, %v771_v50, 0.0  ;;  %v803_v3 = vmul.f32 %v639_v52, %v1367_v18  ;;  %v835_v4 = vmul.f32 %v637_v48, %v637_v48  ;;  %v836_v17 = vmul.f32 %v638_v49, %v638_v49 }
  0x29   :  { %v785_v53 = vadd.f32 %v784_v37, %v783_v47  ;;  %v641_v56 = vld.sshfl [vmem:[#allocation1 + $0x38] sm:$0xff pattern:$0x75316420]  ;;  %v804_v11 = vmul.f32 %v640_v55, %v1369_v19  ;;  %v811_v15 = vsel %vm772_vm0, %v800_v59, 0.0  ;;  %v813_v22 = vsel %vm772_vm0, %v801_v61, 0.0  ;;  %v715_v36 = vld [vmem:[#allocation14 + $0x10] sm:$0xff] }
  0x2a   :  { %681 = vst [vmem:[#allocation1 + $0x30] ss:$2 sm:$0xff] %v668_v46  ;;  %v815_v26 = vsel %vm772_vm0, %v802_v2, 0.0  ;;  %v845_v29 = vsel %vm772_vm0, %v834_v62, 0.0  ;;  %v817_v32 = vsel %vm772_vm0, %v803_v3, 0.0  ;;  %v847_v35 = vsel %vm772_vm0, %v835_v4, 0.0 }
  0x2b   :  { %v787_v57 = vadd.f32 %v786_v51, %v785_v53  ;;  %v819_v33 = vsel %vm772_vm0, %v804_v11, 0.0  ;;  %v837_v38 = vmul.f32 %v639_v52, %v639_v52  ;;  %v716_v42 = vld [vmem:[#allocation14 + $0x18] sm:$0xff]  ;;  %v849_v45 = vsel %vm772_vm0, %v836_v17, 0.0 }
  0x2c   :  { %v634_v0 = vld.sshfl [vmem:[#allocation1] sm:$0xff pattern:$0x75316420]  ;;  %v635_v1 = vld.sshfl [vmem:[#allocation1 + $0x8] sm:$0xff pattern:$0x75316420]  ;;  %v838_v51 = vmul.f32 %v640_v55, %v640_v55  ;;  %v839_v52 = vmul.f32 %v641_v56, %v641_v56 }
  0x2d   :  { %v789_v63 = vadd.f32 %v788_v54, %v787_v57  ;;  %642 = vst [vmem:[#allocation1] ss:$2 sm:$0xff] %v621_v58  ;;  %v798_v5 = vmul.f32 %v634_v0, %v1349_v7  ;;  %v799_v6 = vmul.f32 %v635_v1, %v1351_v8  ;;  %v832_v12 = vmul.f32 %v634_v0, %v634_v0 }
  0x2e   :  { %v833_v16 = vmul.f32 %v635_v1, %v635_v1  ;;  %v684_v39 = vld.sshfl [vmem:[#allocation1 + $0x10] sm:$0xff pattern:$0x75316420]  ;;  %v685_v41 = vld.sshfl [vmem:[#allocation1 + $0x18] sm:$0xff pattern:$0x75316420]  ;;  %v805_v54 = vmul.f32 %v641_v56, %v1378_v27 }
  0x2f   :  { %v791_v14 = vadd.f32 %v790_v60, %v789_v63  ;;  %v808_v20 = vsel %vm772_vm0, %v798_v5, 0.0  ;;  %v809_v21 = vsel %vm772_vm0, %v799_v6, 0.0  ;;  %v842_v23 = vsel %vm772_vm0, %v832_v12, 0.0  ;;  %v686_v46 = vld.sshfl [vmem:[#allocation1 + $0x20] sm:$0xff pattern:$0x75316420] }
  0x30   :  { %v810_v25 = vadd.f32 %v809_v21, %v808_v20  ;;  %v843_v28 = vsel %vm772_vm0, %v833_v16, 0.0  ;;  %v1423_v47 = vld.sshfl [vmem:[#allocation1 + $0x28] sm:$0xff pattern:$0x75316420]  ;;  %725 = vst [vmem:[#allocation1 + $0x10] ss:$2 sm:$0xff] %v714_v30  ;;  %v868_v62 = vmul.f32 %v684_v39, %v1353_v9  ;;  %v869_v6 = vmul.f32 %v685_v41, %v1355_v10 }
  0x31   :  { %792 = vadd.xlane.f32.xlu0 %v791_v14  ;;  %v844_v34 = vadd.f32 %v843_v28, %v842_v23  ;;  %v1428_v58 = vld.sshfl [vmem:[#allocation1 + $0x30] sm:$0xff pattern:$0x75316420]  ;;  %v851_v60 = vsel %vm772_vm0, %v837_v38, 0.0  ;;  %727 = vst [vmem:[#allocation1 + $0x20] ss:$2 sm:$0xff] %v715_v36  ;;  %v902_v16 = vmul.f32 %v684_v39, %v684_v39  ;;  %v870_v28 = vmul.f32 %v686_v46, %v1361_v13 }
  0x32   :  { %v812_v37 = vadd.f32 %v811_v15, %v810_v25  ;;  %v1431_v61 = vld.sshfl [vmem:[#allocation1 + $0x38] sm:$0xff pattern:$0x75316420]  ;;  %v853_v56 = vsel %vm772_vm0, %v838_v51, 0.0  ;;  %v821_v3 = vsel %vm772_vm0, %v805_v54, 0.0  ;;  %v855_v5 = vsel %vm772_vm0, %v839_v52, 0.0 }
  0x33   :  { %v846_v44 = vadd.f32 %v845_v29, %v844_v34  ;;  %729 = vst [vmem:[#allocation1 + $0x30] ss:$2 sm:$0xff] %v716_v42  ;;  %v669_v14 = vld [vmem:[#allocation12 + $0x20] sm:$0xff]  ;;  %v879_v15 = vsel %vm772_vm0, %v868_v62, 0.0  ;;  %v871_v29 = vmul.f32 %v1423_v47, %v1367_v18  ;;  %v903_v30 = vmul.f32 %v685_v41, %v685_v41 }
  0x34   :  { %v643_v48 = vld.sshfl [vmem:[#allocation1] sm:$0xff pattern:$0x75316420]  ;;  %v644_v49 = vld.sshfl [vmem:[#allocation1 + $0x8] sm:$0xff pattern:$0x75316420]  ;;  %v814_v50 = vadd.f32 %v813_v22, %v812_v37  ;;  %v904_v38 = vmul.f32 %v686_v46, %v686_v46  ;;  %v872_v46 = vmul.f32 %v1428_v58, %v1369_v19 }
  0x35   :  { %v664_v53 = vsel %vm568_vm1, %v644_v49, 0.0  ;;  %675 = vst [vmem:[#allocation1] ss:$2 sm:$0xff] %v665_v31  ;;  %v848_v57 = vadd.f32 %v847_v35, %v846_v44  ;;  %v806_v55 = vmul.f32 %v643_v48, %v1391_v40  ;;  %v840_v0 = vmul.f32 %v643_v48, %v643_v48 }
  0x36   :  { %v816_v59 = vadd.f32 %v815_v26, %v814_v50  ;;  %v807_v63 = vmul.f32 %v664_v53, %v1395_v43  ;;  %v841_v12 = vmul.f32 %v664_v53, %v664_v53  ;;  %v913_v50 = vsel %vm772_vm0, %v902_v16, 0.0 }
  0x37   :  { %v850_v1 = vadd.f32 %v849_v45, %v848_v57  ;;  %v823_v17 = vsel %vm772_vm0, %v806_v55, 0.0  ;;  %v857_v22 = vsel %vm772_vm0, %v840_v0, 0.0  ;;  %v881_v53 = vsel %vm772_vm0, %v869_v6, 0.0  ;;  %v732_v62 = vld.sshfl [vmem:[#allocation1 + $0x10] sm:$0xff pattern:$0x75316420] }
  0x38   :  { %v818_v2 = vadd.f32 %v817_v32, %v816_v59  ;;  %v825_v20 = vsel %vm772_vm0, %v807_v63, 0.0  ;;  %v859_v36 = vsel %vm772_vm0, %v841_v12, 0.0  ;;  %v905_v57 = vmul.f32 %v1423_v47, %v1423_v47 }
  0x39   :  { %v852_v4 = vadd.f32 %v851_v60, %v850_v1  ;;  %v915_v59 = vsel %vm772_vm0, %v903_v30, 0.0  ;;  %v713_v60 = vld [vmem:[#allocation14] sm:$0xff]  ;;  %v883_v55 = vsel %vm772_vm0, %v870_v28, 0.0  ;;  %v885_v63 = vsel %vm772_vm0, %v871_v29, 0.0 }
  0x3a   :  { %v820_v11 = vadd.f32 %v819_v33, %v818_v2  ;;  %v917_v1 = vsel %vm772_vm0, %v904_v38, 0.0  ;;  %v906_v47 = vmul.f32 %v1428_v58, %v1428_v58  ;;  %v907_v6 = vmul.f32 %v1431_v61, %v1431_v61  ;;  %v734_v28 = vld.sshfl [vmem:[#allocation1 + $0x20] sm:$0xff pattern:$0x75316420] }
  0x3b   :  { %v854_v21 = vadd.f32 %v853_v56, %v852_v4  ;;  %v936_v12 = vmul.f32 %v732_v62, %v1353_v9  ;;  %v919_v16 = vsel %vm772_vm0, %v905_v57, 0.0  ;;  %v1309_v38 = vmov 0.0  }
  0x3c   :  { %v822_v23 = vadd.f32 %v821_v3, %v820_v11  ;;  %v682_v25 = vld.sshfl [vmem:[#allocation1] sm:$0xff pattern:$0x75316420]  ;;  %v683_v26 = vld.sshfl [vmem:[#allocation1 + $0x8] sm:$0xff pattern:$0x75316420]  ;;  %v873_v3 = vmul.f32 %v1431_v61, %v1378_v27 }
  0x3d   :  { %v856_v31 = vadd.f32 %v855_v5, %v854_v21  ;;  %690 = vst [vmem:[#allocation1] ss:$2 sm:$0xff] %v669_v14  ;;  %v866_v32 = vmul.f32 %v682_v25, %v1349_v7  ;;  %v867_v33 = vmul.f32 %v683_v26, %v1351_v8  ;;  %v900_v34 = vmul.f32 %v682_v25, %v682_v25 }
  0x3e   :  { %v824_v35 = vadd.f32 %v823_v17, %v822_v23  ;;  %v901_v37 = vmul.f32 %v683_v26, %v683_v26  ;;  %v733_v17 = vld.sshfl [vmem:[#allocation1 + $0x18] sm:$0xff pattern:$0x75316420]  ;;  %v889_v25 = vsel %vm772_vm0, %v873_v3, 0.0  ;;  %v921_v61 = vsel %vm772_vm0, %v906_v47, 0.0 }
  0x3f   :  { %v858_v39 = vadd.f32 %v857_v22, %v856_v31  ;;  %v876_v42 = vsel %vm772_vm0, %v866_v32, 0.0  ;;  %v877_v44 = vsel %vm772_vm0, %v867_v33, 0.0  ;;  %v910_v45 = vsel %vm772_vm0, %v900_v34, 0.0  ;;  %v717_v33 = vld [vmem:[#allocation14 + $0x20] sm:$0xff]  ;;  %78 = vst.msk [vmem:[#allocation2] sm:$0xf] %vm77_vm2, %v1309_v38 }
  0x40   :  { %v826_v41 = vadd.f32 %v825_v20, %v824_v35  ;;  %v878_v48 = vadd.f32 %v877_v44, %v876_v42  ;;  %v911_v49 = vsel %vm772_vm0, %v901_v37, 0.0  ;;  %v923_v9 = vsel %vm772_vm0, %v907_v6, 0.0  ;;  %79 = vst.msk [vmem:[#allocation3] sm:$0xf] %vm77_vm2, %v1309_v38 }
  0x41   :  { %v860_v51 = vadd.f32 %v859_v36, %v858_v39  ;;  %v912_v54 = vadd.f32 %v911_v49, %v910_v45  ;;  %v937_v29 = vmul.f32 %v733_v17, %v1355_v10  ;;  %v947_v30 = vsel %vm772_vm0, %v936_v12, 0.0  ;;  %v735_v49 = vld.sshfl [vmem:[#allocation1 + $0x28] sm:$0xff pattern:$0x75316420]  ;;  %80 = vst.msk [vmem:[#allocation4] sm:$0xf] %vm77_vm2, %v1309_v38 }
  0x42   :  { %827 = vadd.xlane.f32.xlu0 %v826_v41  ;;  %v880_v52 = vadd.f32 %v879_v15, %v878_v48  ;;  %v887_v15 = vsel %vm772_vm0, %v872_v46, 0.0  ;;  %v938_v10 = vmul.f32 %v734_v28, %v1361_v13  ;;  %v970_v45 = vmul.f32 %v732_v62, %v732_v62  ;;  %81 = vst.msk [vmem:[#allocation5] sm:$0xf] %vm77_vm2, %v1309_v38 }
  0x43   :  { %861 = vadd.xlane.f32.xlu2 %v860_v51  ;;  %v914_v0 = vadd.f32 %v913_v50, %v912_v54  ;;  %v971_v41 = vmul.f32 %v733_v17, %v733_v17  ;;  %82 = vst.msk [vmem:[#allocation6] sm:$0xf] %vm77_vm2, %v1309_v38 }
  0x44   :  { %v691_v2 = vld.sshfl [vmem:[#allocation1] sm:$0xff pattern:$0x75316420]  ;;  %v692_v56 = vld.sshfl [vmem:[#allocation1 + $0x8] sm:$0xff pattern:$0x75316420]  ;;  %v882_v4 = vadd.f32 %v881_v53, %v880_v52 }
  0x45   :  { %v712_v5 = vsel %vm568_vm1, %v692_v56, 0.0  ;;  %v916_v11 = vadd.f32 %v915_v59, %v914_v0  ;;  %723 = vst [vmem:[#allocation1] ss:$2 sm:$0xff] %v713_v60  ;;  %v874_v20 = vmul.f32 %v691_v2, %v1391_v40  ;;  %v908_v21 = vmul.f32 %v691_v2, %v691_v2  ;;  %v736_v52 = vld.sshfl [vmem:[#allocation1 + $0x30] sm:$0xff pattern:$0x75316420] }
  0x46   :  { %v884_v14 = vadd.f32 %v883_v55, %v882_v4  ;;  %v875_v58 = vmul.f32 %v712_v5, %v1395_v43  ;;  %v909_v32 = vmul.f32 %v712_v5, %v712_v5  ;;  %v972_v59 = vmul.f32 %v734_v28, %v734_v28  ;;  %v737_v4 = vld.sshfl [vmem:[#allocation1 + $0x38] sm:$0xff pattern:$0x75316420]  ;;  %83 = vst.msk [vmem:[#allocation7] sm:$0xf] %vm77_vm2, %v1309_v38 }
  0x47   :  { %v918_v22 = vadd.f32 %v917_v1, %v916_v11  ;;  %v891_v34 = vsel %vm772_vm0, %v874_v20, 0.0  ;;  %v925_v37 = vsel %vm772_vm0, %v908_v21, 0.0  ;;  %v981_v0 = vsel %vm772_vm0, %v970_v45, 0.0  ;;  %84 = vst.msk [vmem:[#allocation8] sm:$0xf] %vm77_vm2, %v1309_v38 }
  0x48   :  { %v886_v23 = vadd.f32 %v885_v63, %v884_v14  ;;  %v893_v35 = vsel %vm772_vm0, %v875_v58, 0.0  ;;  %v927_v46 = vsel %vm772_vm0, %v909_v32, 0.0  ;;  %v939_v2 = vmul.f32 %v735_v49, %v1367_v18 }
  0x49   :  { %v920_v26 = vadd.f32 %v919_v16, %v918_v22  ;;  %v949_v56 = vsel %vm772_vm0, %v937_v29, 0.0  ;;  %v973_v5 = vmul.f32 %v735_v49, %v735_v49  ;;  %v983_v6 = vsel %vm772_vm0, %v971_v41, 0.0 }
  0x4a   :  { %v888_v31 = vadd.f32 %v887_v15, %v886_v23  ;;  %v940_v11 = vmul.f32 %v736_v52, %v1369_v19  ;;  %v951_v12 = vsel %vm772_vm0, %v938_v10, 0.0  ;;  %v985_v18 = vsel %vm772_vm0, %v972_v59, 0.0 }
  0x4b   :  { %v922_v36 = vadd.f32 %v921_v61, %v920_v26  ;;  %v974_v20 = vmul.f32 %v736_v52, %v736_v52  ;;  %v941_v58 = vmul.f32 %v737_v4, %v1378_v27  ;;  %v953_v21 = vsel %vm772_vm0, %v939_v2, 0.0 }
  0x4c   :  { %v890_v39 = vadd.f32 %v889_v25, %v888_v31  ;;  %v730_v42 = vld.sshfl [vmem:[#allocation1] sm:$0xff pattern:$0x75316420]  ;;  %v731_v44 = vld.sshfl [vmem:[#allocation1 + $0x8] sm:$0xff pattern:$0x75316420]  ;;  %v975_v25 = vmul.f32 %v737_v4, %v737_v4 }
  0x4d   :  { %v924_v48 = vadd.f32 %v923_v9, %v922_v36  ;;  %738 = vst [vmem:[#allocation1] ss:$2 sm:$0xff] %v717_v33  ;;  %v934_v50 = vmul.f32 %v730_v42, %v1349_v7  ;;  %v935_v51 = vmul.f32 %v731_v44, %v1351_v8  ;;  %v968_v53 = vmul.f32 %v730_v42, %v730_v42 }
  0x4e   :  { %v892_v54 = vadd.f32 %v891_v34, %v890_v39  ;;  %v969_v57 = vmul.f32 %v731_v44, %v731_v44  ;;  %v987_v61 = vsel %vm772_vm0, %v973_v5, 0.0  ;;  %v955_v9 = vsel %vm772_vm0, %v940_v11, 0.0  ;;  %v865_v5 = vld [vmem:[#allocation5] sm:$0xf] }
  0x4f   :  { %v926_v60 = vadd.f32 %v925_v37, %v924_v48  ;;  %v944_v13 = vsel %vm772_vm0, %v934_v50, 0.0  ;;  %v945_v62 = vsel %vm772_vm0, %v935_v51, 0.0  ;;  %v978_v55 = vsel %vm772_vm0, %v968_v53, 0.0  ;;  %v761_v48 = vld [vmem:[#allocation2] sm:$0xf] }
  0x50   :  { %v894_v7 = vadd.f32 %v893_v35, %v892_v54  ;;  %v946_v8 = vadd.f32 %v945_v62, %v944_v13  ;;  %v979_v63 = vsel %vm772_vm0, %v969_v57, 0.0  ;;  %v989_v31 = vsel %vm772_vm0, %v974_v20, 0.0  ;;  %v797_v54 = vld [vmem:[#allocation3] sm:$0xf] }
  0x51   :  { %v928_v1 = vadd.f32 %v927_v46, %v926_v60  ;;  %v980_v3 = vadd.f32 %v979_v63, %v978_v55  ;;  %v957_v32 = vsel %vm772_vm0, %v941_v58, 0.0  ;;  %v991_v35 = vsel %vm772_vm0, %v975_v25, 0.0  ;;  %v831_v46 = vld [vmem:[#allocation4] sm:$0xf] }
  0x52   :  { %895 = vadd.xlane.f32.xlu1 %v894_v7  ;;  %v948_v47 = vadd.f32 %v947_v30, %v946_v8 }
  0x53   :  { %929 = vadd.xlane.f32.xlu2 %v928_v1  ;;  %v982_v14 = vadd.f32 %v981_v0, %v980_v3 }
  0x54   :  { %v739_v15 = vld.sshfl [vmem:[#allocation1] sm:$0xff pattern:$0x75316420]  ;;  %v740_v16 = vld.sshfl [vmem:[#allocation1 + $0x8] sm:$0xff pattern:$0x75316420]  ;;  %v950_v17 = vadd.f32 %v949_v56, %v948_v47 }
  0x55   :  { %v984_v22 = vadd.f32 %v983_v6, %v982_v14  ;;  %v760_v23 = vsel %vm568_vm1, %v740_v16, 0.0  ;;  %v942_v26 = vmul.f32 %v739_v15, %v1391_v40  ;;  %v976_v30 = vmul.f32 %v739_v15, %v739_v15  ;;  %v899_v6 = vld [vmem:[#allocation6] sm:$0xf] }
  0x56   :  { %v952_v19 = vadd.f32 %v951_v12, %v950_v17  ;;  %v943_v27 = vmul.f32 %v760_v23, %v1395_v43  ;;  %v977_v34 = vmul.f32 %v760_v23, %v760_v23 }
  0x57   :  { %v986_v28 = vadd.f32 %v985_v18, %v984_v22  ;;  %v959_v36 = vsel %vm772_vm0, %v942_v26, 0.0  ;;  %v993_v38 = vsel %vm772_vm0, %v976_v30, 0.0 }
  0x58   :  { %v954_v29 = vadd.f32 %v953_v21, %v952_v19  ;;  %v961_v39 = vsel %vm772_vm0, %v943_v27, 0.0  ;;  %v995_v10 = vsel %vm772_vm0, %v977_v34, 0.0 }
  0x59   :  { %v988_v33 = vadd.f32 %v987_v61, %v986_v28  ;;  %v933_v61 = vld [vmem:[#allocation7] sm:$0xf]  ;;  %v967_v28 = vld [vmem:[#allocation8] sm:$0xf] }
  0x5a   :  { %v956_v24 = vadd.f32 %v955_v9, %v954_v29 }
  0x5b   :  { %v990_v37 = vadd.f32 %v989_v31, %v988_v33 }
  0x5c   :  { %v958_v40 = vadd.f32 %v957_v32, %v956_v24 }
  0x5d   :  { %v992_v42 = vadd.f32 %v991_v35, %v990_v37 }
  0x5e   :  { %v960_v44 = vadd.f32 %v959_v36, %v958_v40 }
  0x5f   :  { %v994_v43 = vadd.f32 %v993_v38, %v992_v42 }
  0x60   :  { %v962_v45 = vadd.f32 %v961_v39, %v960_v44 }
  0x61   :  { %v996_v41 = vadd.f32 %v995_v10, %v994_v43 }
  0x62   :  { %963 = vadd.xlane.f32.xlu1 %v962_v45 }
  0x63   :  { %997 = vadd.xlane.f32.xlu0 %v996_v41 }
  0xa4   :  { %v793_v49 = vpop.xlane.xlu0 %792 }
  0xa5   :  { %v794_v50 = vadd.f32 %v793_v49, %v761_v48 }
  0xa7   :  { %796 = vst.msk [vmem:[#allocation2] sm:$0xf] %vm77_vm2, %v794_v50 }
  0xae   :  { %v1523_v51 = vld [vmem:[#allocation2] sm:$0xf] }
  0xaf   :  { %v1005_v53 = vadd.f32 1.1920929e-07, %v1523_v51 }
  0xb1   :  { %1161 = vrcp.f32 %v1005_v53  ;;  %v1017_v55 = vand.u32 2147483648, %v1005_v53  ;;  %vm1011_vm3 = vweird.f32 %v1005_v53  ;;  %v1015_v8 = vand.u32 2147483647, %v1005_v53 }
  0xb3   :  { %v1018_v0 = vor.u32 1.1754944e-38, %v1017_v55  ;;  %vm1016_vm6 = vcmp.eq.f32.partialorder %v1015_v8, 8.507059e+37 }
  0xb5   :  { %v828_v52 = vpop.xlane.xlu0 %827 }
  0xb6   :  { %v829_v59 = vadd.f32 %v828_v52, %v797_v54  ;;  %v862_v60 = vpop.xlane.xlu2 %861 }
  0xb7   :  { %v1162_v57 = vpop.eup %1161  ;;  %v863_v13 = vadd.f32 %v862_v60, %v831_v46 }
  0xb8   :  { %v1007_v62 = vmul.f32 %v1162_v57, %v1005_v53  ;;  %830 = vst.msk [vmem:[#allocation3] sm:$0xf] %vm77_vm2, %v829_v59  ;;  %vm1012_vm4 = vweird.f32 %v1162_v57 }
  0xb9   :  { %864 = vst.msk [vmem:[#allocation4] sm:$0xf] %vm77_vm2, %v863_v13  ;;  %vm1013_vm5 = vmor %vm1011_vm3, %vm1012_vm4 }
  0xba   :  { %v1008_v7 = vsub.f32 1.0, %v1007_v62 }
  0xbc   :  { %v1009_v63 = vmul.f32 %v1162_v57, %v1008_v7 }
  0xbe   :  { %v1010_v1 = vadd.f32 %v1162_v57, %v1009_v63 }
  0xbf   :  { %v1002_v2 = vld [vmem:[#allocation3] sm:$0xf] }
  0xc0   :  { %v1014_v56 = vsel %vm1013_vm5, %v1162_v57, %v1010_v1  ;;  %v1004_v3 = vadd.f32 1.1920929e-07, %v1002_v2  ;;  %v1003_v18 = vld [vmem:[#allocation4] sm:$0xf]  ;;  %vm1133_vm5 = vcmask 0  }
  0xc1   :  { %v1019_v4 = vsel %vm1016_vm6, %v1018_v0, %v1014_v56 }
  0xc2   :  { %v1020_v47 = vmul.f32 %v1019_v4, %v1004_v3 }
  0xc4   :  { %v1021_v11 = vmul.f32 %v1020_v47, %v1020_v47  ;;  %v1024_v12 = vmul.f32 2.0, %v1020_v47 }
  0xc5   :  { %v896_v14 = vpop.xlane.xlu1 %895 }
  0xc6   :  { %v897_v15 = vadd.f32 %v896_v14, %v865_v5  ;;  %v930_v16 = vpop.xlane.xlu2 %929  ;;  %v1025_v17 = vmul.f32 %v1024_v12, %v1002_v2  ;;  %v1529_v58 = vmul.f32 %v1021_v11, %v1523_v51 }
  0xc7   :  { %v931_v20 = vadd.f32 %v930_v16, %v899_v6 }
  0xc8   :  { %898 = vst.msk [vmem:[#allocation5] sm:$0xf] %vm77_vm2, %v897_v15  ;;  %v1026_v21 = vsub.f32 %v1003_v18, %v1025_v17  ;;  %v1023_v11 = vadd.f32 1.1920929e-07, %v1529_v58 }
  0xc9   :  { %932 = vst.msk [vmem:[#allocation6] sm:$0xf] %vm77_vm2, %v931_v20 }
  0xca   :  { %v1027_v22 = vadd.f32 %v1026_v21, %v1529_v58 }
  0xcc   :  { %v1028_v23 = vmax.f32 %v1027_v22, 0.0 }
  0xce   :  { %v1029_v26 = vadd.f32 1.1920929e-07, %v1028_v23 }
  0xcf   :  { %v1049_v19 = vld [vmem:[#allocation5] sm:$0xf] }
  0xd0   :  { %v1051_v25 = vadd.f32 1.1920929e-07, %v1049_v19  ;;  %1163 = vrcp.f32 %v1029_v26  ;;  %v1050_v24 = vld [vmem:[#allocation6] sm:$0xf]  ;;  %v1041_v62 = vand.u32 2147483648, %v1029_v26  ;;  %vm1035_vm9 = vweird.f32 %v1029_v26 }
  0xd1   :  { %v1039_v0 = vand.u32 2147483647, %v1029_v26 }
  0xd2   :  { %v1052_v9 = vmul.f32 %v1051_v25, %v1019_v4  ;;  %v1042_v3 = vor.u32 1.1754944e-38, %v1041_v62 }
  0xd3   :  { %vm1040_vm14 = vcmp.eq.f32.partialorder %v1039_v0, 8.507059e+37 }
  0xd4   :  { %v1056_v30 = vmul.f32 2.0, %v1052_v9  ;;  %v1053_v32 = vmul.f32 %v1052_v9, %v1052_v9 }
  0xd5   :  { %v964_v29 = vpop.xlane.xlu1 %963 }
  0xd6   :  { %v965_v31 = vadd.f32 %v964_v29, %v933_v61  ;;  %v998_v27 = vpop.xlane.xlu0 %997  ;;  %v1057_v34 = vmul.f32 %v1056_v30, %v1049_v19  ;;  %v1054_v35 = vmul.f32 %v1053_v32, %v1523_v51  ;;  %v1164_v40 = vpop.eup %1163 }
  0xd7   :  { %v999_v33 = vadd.f32 %v998_v27, %v967_v28  ;;  %v1031_v42 = vmul.f32 %v1164_v40, %v1029_v26  ;;  %vm1036_vm7 = vweird.f32 %v1164_v40 }
  0xd8   :  { %966 = vst.msk [vmem:[#allocation7] sm:$0xf] %vm77_vm2, %v965_v31  ;;  %v1058_v36 = vsub.f32 %v1050_v24, %v1057_v34  ;;  %vm1037_vm10 = vmor %vm1035_vm9, %vm1036_vm7  ;;  %v1055_v47 = vadd.f32 1.1920929e-07, %v1054_v35  ;;  %v1310_v31 = vmov 4.0  }
  0xd9   :  { %1000 = vst.msk [vmem:[#allocation8] sm:$0xf] %vm77_vm2, %v999_v33  ;;  %v1032_v45 = vsub.f32 1.0, %v1031_v42 }
  0xda   :  { %v1059_v37 = vadd.f32 %v1058_v36, %v1054_v35 }
  0xdb   :  { %v1033_v54 = vmul.f32 %v1164_v40, %v1032_v45 }
  0xdc   :  { %v1060_v38 = vmax.f32 %v1059_v37, 0.0 }
  0xdd   :  { %v1034_v13 = vadd.f32 %v1164_v40, %v1033_v54 }
  0xde   :  { %v1061_v44 = vadd.f32 1.1920929e-07, %v1060_v38 }
  0xdf   :  { %v1081_v39 = vld [vmem:[#allocation7] sm:$0xf]  ;;  %v1038_v56 = vsel %vm1037_vm10, %v1164_v40, %v1034_v13 }
  0xe0   :  { %v1083_v10 = vadd.f32 1.1920929e-07, %v1081_v39  ;;  %1165 = vrcp.f32 %v1061_v44  ;;  %v1082_v49 = vld [vmem:[#allocation8] sm:$0xf]  ;;  %v1073_v55 = vand.u32 2147483648, %v1061_v44  ;;  %v1071_v8 = vand.u32 2147483647, %v1061_v44 }
  0xe1   :  { %vm1067_vm11 = vweird.f32 %v1061_v44  ;;  %v1043_v6 = vsel %vm1040_vm14, %v1042_v3, %v1038_v56 }
  0xe2   :  { %v1084_v43 = vmul.f32 %v1083_v10, %v1019_v4  ;;  %vm1072_vm13 = vcmp.eq.f32.partialorder %v1071_v8, 8.507059e+37  ;;  %v1044_v14 = vmul.f32 %v1043_v6, %v1023_v11 }
  0xe4   :  { %v1085_v41 = vmul.f32 %v1084_v43, %v1084_v43  ;;  %v1088_v48 = vmul.f32 2.0, %v1084_v43 }
  0xe6   :  { %v1089_v50 = vmul.f32 %v1088_v48, %v1081_v39  ;;  %v1166_v53 = vpop.eup %1165  ;;  %v1086_v52 = vmul.f32 %v1085_v41, %v1523_v51  ;;  %v1074_v51 = vor.u32 1.1754944e-38, %v1073_v55 }
  0xe7   :  { %v1063_v46 = vmul.f32 %v1166_v53, %v1061_v44  ;;  %vm1068_vm8 = vweird.f32 %v1166_v53 }
  0xe8   :  { %v1090_v57 = vsub.f32 %v1082_v49, %v1089_v50  ;;  %vm1069_vm12 = vmor %vm1067_vm11, %vm1068_vm8  ;;  %v1087_v61 = vadd.f32 1.1920929e-07, %v1086_v52 }
  0xe9   :  { %v1064_v59 = vsub.f32 1.0, %v1063_v46 }
  0xea   :  { %v1091_v60 = vadd.f32 %v1090_v57, %v1086_v52 }
  0xeb   :  { %v1065_v7 = vmul.f32 %v1166_v53, %v1064_v59 }
  0xec   :  { %v1092_v63 = vmax.f32 %v1091_v60, 0.0 }
  0xed   :  { %v1066_v1 = vadd.f32 %v1166_v53, %v1065_v7 }
  0xee   :  { %v1093_v2 = vadd.f32 1.1920929e-07, %v1092_v63 }
  0xef   :  { %v1070_v4 = vsel %vm1069_vm12, %v1166_v53, %v1066_v1 }
  0xf0   :  { %1167 = vrcp.f32 %v1093_v2  ;;  %v1075_v5 = vsel %vm1072_vm13, %v1074_v51, %v1070_v4  ;;  %v1105_v17 = vand.u32 2147483648, %v1093_v2  ;;  %v1103_v21 = vand.u32 2147483647, %v1093_v2 }
  0xf1   :  { %v1076_v12 = vmul.f32 %v1075_v5, %v1055_v47  ;;  %vm1099_vm0 = vweird.f32 %v1093_v2 }
  0xf2   :  { %v1106_v19 = vor.u32 1.1754944e-38, %v1105_v17  ;;  %vm1104_vm3 = vcmp.eq.f32.partialorder %v1103_v21, 8.507059e+37 }
  0xf3   :  { %1169 = vlog2.f32 %v1076_v12 }
  0xf4   :  { %1171 = vlog2.f32 %v1044_v14 }
  0xf6   :  { %v1168_v18 = vpop.eup %1167 }
  0xf7   :  { %v1095_v15 = vmul.f32 %v1168_v18, %v1093_v2  ;;  %vm1100_vm15 = vweird.f32 %v1168_v18 }
  0xf8   :  { %vm1101_vm1 = vmor %vm1099_vm0, %vm1100_vm15 }
  0xf9   :  { %v1096_v16 = vsub.f32 1.0, %v1095_v15  ;;  %v1170_v22 = vpop.eup %1169 }
  0xfa   :  { %v1172_v25 = vpop.eup %1171  ;;  %v1078_v58 = vmul.f32 0.6931472, %v1170_v22 }
  0xfb   :  { %v1097_v20 = vmul.f32 %v1168_v18, %v1096_v16  ;;  %v1046_v29 = vmul.f32 0.6931472, %v1172_v25 }
  0xfc   :  { %v1079_v30 = vmul.f32 0.4342945, %v1078_v58 }
  0xfd   :  { %v1098_v23 = vadd.f32 %v1168_v18, %v1097_v20  ;;  %v1047_v27 = vmul.f32 0.4342945, %v1046_v29 }
  0xfe   :  { %v1080_v32 = vmul.f32 10.0, %v1079_v30 }
  0xff   :  { %v1102_v26 = vsel %vm1101_vm1, %v1168_v18, %v1098_v23  ;;  %v1048_v24 = vmul.f32 10.0, %v1047_v27 }
 0x100   :  { %v1107_v9 = vsel %vm1104_vm3, %v1106_v19, %v1102_v26  ;;  %v1114_v37 = vmul.f32 -0.2, %v1080_v32 }
 0x101   :  { %v1108_v28 = vmul.f32 %v1107_v9, %v1087_v61  ;;  %v1113_v38 = vmul.f32 -1.6, %v1048_v24 }
 0x103   :  { %1173 = vlog2.f32 %v1108_v28  ;;  %v1115_v42 = vadd.f32 %v1114_v37, %v1113_v38 }
 0x104   :  { %1175 = vrcp.f32 %v1310_v31 }
 0x109   :  { %v1174_v33 = vpop.eup %1173 }
 0x10a   :  { %v1110_v34 = vmul.f32 0.6931472, %v1174_v33  ;;  %v1176_v35 = vpop.eup %1175 }
 0x10b   :  { %v1126_v39 = vmul.f32 4.0, %v1176_v35  ;;  %vm1130_vm4 = vweird.f32 %v1176_v35 }
 0x10c   :  { %v1111_v36 = vmul.f32 0.4342945, %v1110_v34 }
 0x10d   :  { %v1127_v43 = vsub.f32 1.0, %v1126_v39 }
 0x10e   :  { %v1112_v40 = vmul.f32 10.0, %v1111_v36 }
 0x10f   :  { %v1128_v48 = vmul.f32 %v1176_v35, %v1127_v43 }
 0x110   :  { %v1116_v44 = vmul.f32 -0.2, %v1112_v40 }
 0x111   :  { %v1129_v53 = vadd.f32 %v1176_v35, %v1128_v48 }
 0x112   :  { %v1117_v10 = vadd.f32 %v1116_v44, %v1115_v42 }
 0x113   :  { %v1131_v52 = vsel %vm1130_vm4, %v1176_v35, %v1129_v53 }
 0x114   :  { %v1118_v45 = vsel %vm77_vm2, %v1117_v10, 0.0 }
 0x115   :  { %v1119_v41 = vrot.slane %v1118_v45, 4 }
 0x117   :  { %v1120_v49 = vadd.f32 %v1119_v41, %v1118_v45 }
 0x119   :  { %v1121_v50 = vrot.slane %v1120_v49, 2 }
 0x11b   :  { %v1122_v54 = vadd.f32 %v1121_v50, %v1120_v49 }
 0x11d   :  { %v1123_v46 = vrot.slane %v1122_v54, 1 }
 0x11f   :  { %v1124_v57 = vadd.f32 %v1123_v46, %v1122_v54 }
 0x121   :  { %v1132_v59 = vmul.f32 %v1131_v52, %v1124_v57 }
 0x123   :  { %1134 = vst.msk [vmem:[#allocation17] sm:$0x1] %vm1133_vm5, %v1132_v59 }
 0x124   :  { %1145 = dma.vmem_to_hbm [thread:$0]  %s1141_s3, 16, %s1143_s9, [#allocation11]  }
 0x125   :  { %1303 = dma.done.wait [#allocation11], 16  }
 0x126   :  { %1304 = vsyncadd [#allocation11], 4294967280 }
 0x127   :  { %1150 = vsyncpa [#allocation10], 1 }
 0x128   :  { %1151 = vsyncpa [#allocation13], 1 }
 0x129   :  { %1152 = vsyncpa [#allocation16], 1 }
 0x12a   :  { %1153 = vsyncpa [#allocation11], 1 }

</bundles_post_ra>
